<compile_context>
chip_gen: v7x
topology: tpu7x:2x2x1
jax: 0.10.0
libtpu: 0.0.40
codegen_flags: <defaults>
</compile_context>

<pallas_src>
import jax
import jax.numpy as jnp
from jax.experimental import pallas as pl
from jax.experimental.pallas import tpu as pltpu


def _round_up(x: int, m: int) -> int:
    return ((x + m - 1) // m) * m


# ----------------------------------------------------------------------------
# Kernel 1: softmax over classes + sort keys (-|fg - p_c|) and fg masks,
# tiled & pipelined over the pixel axis.
# ----------------------------------------------------------------------------
def _softmax_errors_kernel(logits_ref, labels_ref, out_ref):
    # logits_ref: (C, TP)   f32
    # labels_ref: (1, TP)   i32   (padding pixels carry label -1)
    # out_ref:    (2, C, TP) f32  plane 0 = -err (sort keys), plane 1 = fg
    logits = logits_ref[...]
    labels = labels_ref[...]

    # Softmax over the class (sublane) axis; all elementwise math stays f32
    # (v5e has no bf16 VPU/EUP path).
    m = jnp.max(logits, axis=0, keepdims=True)
    e = jnp.exp(logits - m)
    probs = e / jnp.sum(e, axis=0, keepdims=True)

    cls = jax.lax.broadcasted_iota(jnp.int32, logits.shape, 0)   # class id/row
    fg = (labels == cls).astype(jnp.float32)                     # (C, TP)
    valid = (labels >= 0).astype(jnp.float32)                    # 0 on padding
    neg_err = -(jnp.abs(fg - probs) * valid)  # ascending key == descending err

    out_ref[0, :, :] = neg_err
    out_ref[1, :, :] = fg


# ----------------------------------------------------------------------------
# Kernel 2: blocked streaming Lovasz scan with a running cumsum carry.
# ----------------------------------------------------------------------------
def _lovasz_scan_kernel(key_ref, fg_ref, gts_ref, tri_ref, loss_ref,
                        carry_ref, acc_ref):
    # key_ref : (C, TP)  f32  -err, globally sorted ascending (err descending)
    # fg_ref  : (C, TP)  bf16 one-vs-all masks in the same sorted order
    # gts_ref : (C, 1)   f32  total fg count per class
    # tri_ref : (TP, TP) bf16 lower-triangular cumsum operator (constant)
    # loss_ref: (1, 1)   f32  final scalar loss
    # carry_ref / acc_ref: (C, 1) f32 running fg-cumsum carry / per-class dot
    k = pl.program_id(0)
    TP = key_ref.shape[1]

    @pl.when(k == 0)
    def _init():
        carry_ref[...] = jnp.zeros_like(carry_ref)
        acc_ref[...] = jnp.zeros_like(acc_ref)

    err = -key_ref[...]                              # (C, TP) f32, sorted desc
    fg16 = fg_ref[...]                               # (C, TP) bf16, 0/1
    fg = fg16.astype(jnp.float32)
    gts = gts_ref[...]                               # (C, 1)

    # Within-block inclusive cumsum of fg along sorted positions (exact:
    # 0/1 bf16 operands, f32 accumulation).
    cum_local = jnp.dot(fg16, tri_ref[...],
                        preferred_element_type=jnp.float32)       # (C, TP)
    cum_inc = carry_ref[...] + cum_local   # global inclusive cumsum of fg
    cum_exc = cum_inc - fg                 # global exclusive cumsum of fg

    gidx_i = jax.lax.broadcasted_iota(jnp.int32, err.shape, 1) + k * TP
    gidx = gidx_i.astype(jnp.float32)      # global 0-based sorted position

    # jaccard at position i, and at position i-1 via the exclusive cumsum.
    # cumsum(1 - fg)_i == (i + 1) - cumsum(fg)_i, so no second matmul needed.
    jac_i = 1.0 - (gts - cum_inc) / (gts + (gidx + 1.0) - cum_inc)
    jac_p = 1.0 - (gts - cum_exc) / (gts + gidx - cum_exc)
    jac_p = jnp.where(gidx_i == 0, 0.0, jac_p)   # grad[0] = jaccard[0]
    grad = jac_i - jac_p                         # Lovasz gradient (first diff)

    acc_ref[...] += jnp.sum(err * grad, axis=1, keepdims=True)     # (C, 1)
    carry_ref[...] += jnp.sum(fg, axis=1, keepdims=True)           # new carry

    @pl.when(k == pl.num_programs(0) - 1)
    def _finalize():
        present = (gts > 0.0).astype(jnp.float32)                  # (C, 1)
        num = jnp.sum(acc_ref[...] * present, axis=0, keepdims=True)
        den = jnp.sum(present, axis=0, keepdims=True)
        loss_ref[...] = jnp.where(den > 0.0, num / den, 0.0)       # empty -> 0


# ----------------------------------------------------------------------------
# Wrapper: layout transform, tiling/padding, sort, and the two pallas_calls.
# ----------------------------------------------------------------------------
def lovasz_softmax_pallas(logits_nchw, labels_bhw):
    B, C, H, W = logits_nchw.shape
    P = B * H * W

    LANE = 128
    TP = max(LANE, min(1024, _round_up(P, LANE)))   # lane-tile, fits all gens
    P_pad = _round_up(P, TP)
    n_blk = P_pad // TP

    # [B,C,H,W] -> [C,P] slab; pixel order matches permute(0,2,3,1).view(-1,C)
    logits_cp = jnp.transpose(logits_nchw, (1, 0, 2, 3)).reshape(C, P)
    logits_cp = logits_cp.astype(jnp.float32)
    labels_p = labels_bhw.reshape(1, P).astype(jnp.int32)
    if P_pad != P:
        # Padding pixels: label -1 -> fg = 0 and err = 0, which is exactly
        # loss-neutral (they sort to the end and contribute nothing).
        logits_cp = jnp.pad(logits_cp, ((0, 0), (0, P_pad - P)))
        labels_p = jnp.pad(labels_p, ((0, 0), (0, P_pad - P)),
                           constant_values=-1)

    packed = pl.pallas_call(
        _softmax_errors_kernel,
        grid=(n_blk,),
        out_shape=jax.ShapeDtypeStruct((2, C, P_pad), jnp.float32),
        in_specs=[pl.BlockSpec((C, TP), lambda i: (0, i)),
                  pl.BlockSpec((1, TP), lambda i: (0, i))],
        out_specs=pl.BlockSpec((2, C, TP), lambda i: (0, 0, i)),
        compiler_params=pltpu.CompilerParams(
            dimension_semantics=("parallel",),
            vmem_limit_bytes=32 * 1024 * 1024),
    )(logits_cp, labels_p)

    neg_err = packed[0]                            # (C, P_pad) sort keys
    fg = packed[1]                                 # (C, P_pad) 0/1 masks
    gts = jnp.sum(fg, axis=1, keepdims=True)       # (C, 1) per-class count

    # TODO(synk): torch.sort (descending) has no Mosaic/Pallas TPU sort
    # primitive; one multi-operand stable lax.sort (key = -err) is done in
    # plain JAX between kernels (no argsort + gather passes).
    key_sorted, fg_sorted = jax.lax.sort((neg_err, fg), dimension=1, num_keys=1)
    fg_sorted = fg_sorted.astype(jnp.bfloat16)     # 0/1 -> lossless, half DMA

    # Constant lower-triangular cumsum operator for one block (0/1 in bf16).
    idx = jnp.arange(TP, dtype=jnp.int32)
    tri = (idx[:, None] <= idx[None, :]).astype(jnp.bfloat16)

    loss = pl.pallas_call(
        _lovasz_scan_kernel,
        grid=(n_blk,),
        out_shape=jax.ShapeDtypeStruct((1, 1), jnp.float32),
        in_specs=[pl.BlockSpec((C, TP), lambda k: (0, k)),
                  pl.BlockSpec((C, TP), lambda k: (0, k)),
                  pl.BlockSpec((C, 1), lambda k: (0, 0)),
                  pl.BlockSpec((TP, TP), lambda k: (0, 0))],
        out_specs=pl.BlockSpec((1, 1), lambda k: (0, 0)),
        scratch_shapes=[pltpu.VMEM((C, 1), jnp.float32),   # cumsum carry
                        pltpu.VMEM((C, 1), jnp.float32)],  # per-class dot acc
        compiler_params=pltpu.CompilerParams(
            dimension_semantics=("arbitrary",),            # sequential carry
            vmem_limit_bytes=32 * 1024 * 1024),
    )(key_sorted, fg_sorted, gts, tri)

    return loss[0, 0]


# ----------------------------------------------------------------------------
# Pure-JAX reference (mirrors the PyTorch forward) for the correctness check.
# ----------------------------------------------------------------------------
def lovasz_softmax_reference(logits_nchw, labels_bhw):
    B, C, H, W = logits_nchw.shape
    probas = jax.nn.softmax(logits_nchw.astype(jnp.float32), axis=1)
    probas = jnp.transpose(probas, (0, 2, 3, 1)).reshape(-1, C)
    labels = labels_bhw.reshape(-1)
    losses = []
    for c in range(C):
        fg = (labels == c).astype(jnp.float32)
        if float(fg.sum()) == 0.0:         # classes='present'
            continue
        errors = jnp.abs(fg - probas[:, c])
        perm = jnp.argsort(-errors)
        errors_sorted = errors[perm]
        fg_sorted = fg[perm]
        gts = fg_sorted.sum()
        inter = gts - jnp.cumsum(fg_sorted)
        union = gts + jnp.cumsum(1.0 - fg_sorted)
        jac = 1.0 - inter / union
        jac = jnp.concatenate([jac[:1], jac[1:] - jac[:-1]])
        losses.append(jnp.dot(errors_sorted, jac))
    if not losses:
        return jnp.float32(0.0)
    return sum(losses) / len(losses)


if __name__ == "__main__":
    key = jax.random.PRNGKey(0)

    # Primary check: module-consistent small shapes (B=2, C=4, 16x16).
    k1, k2, k3, k4 = jax.random.split(key, 4)
    B, C, H, W = 2, 4, 16, 16
    # "probas" in the module are pre-softmax logits (F.softmax applied inside).
    x = jax.random.normal(k1, (B, C, H, W), dtype=jnp.float32)
    labels = jax.random.randint(k2, (B, H, W), 0, C, dtype=jnp.int32)

    loss = lovasz_softmax_pallas(x, labels)
    jax.block_until_ready(loss)
    ref = lovasz_softmax_reference(x, labels)
    assert abs(float(loss) - float(ref)) < 1e-4, (float(loss), float(ref))

    # Secondary check: non-tile-multiple pixel count -> exercises the blocked
    # scan's cross-block carry and the padding path (P=1152 -> 2 blocks).
    B2, H2, W2 = 2, 24, 24
    x2 = jax.random.normal(k3, (B2, C, H2, W2), dtype=jnp.float32)
    labels2 = jax.random.randint(k4, (B2, H2, W2), 0, C, dtype=jnp.int32)

    loss2 = lovasz_softmax_pallas(x2, labels2)
    jax.block_until_ready(loss2)
    ref2 = lovasz_softmax_reference(x2, labels2)
    assert abs(float(loss2) - float(ref2)) < 1e-4, (float(loss2), float(ref2))

    print("KERNEL_OK")
</pallas_src>

<mosaic_0001>
module attributes {stable_mosaic.version = 11 : i64} {
  func.func @_softmax_errors_kernel(%arg0: i32, %arg1: memref<4x512xf32, #tpu.memory_space<vmem>>, %arg2: memref<1x512xi32, #tpu.memory_space<vmem>>, %arg3: memref<2x4x512xf32, #tpu.memory_space<vmem>>) attributes {dimension_semantics = [#tpu.dimension_semantics<parallel>], iteration_bounds = array<i64: 1>, scalar_prefetch = 0 : i64, scratch_operands = 0 : i64, tpu.core_type = #tpu.core_type<tc>, window_params = [{transform_indices = @transform_0, window_bounds = array<i64: 4, 512>}, {transform_indices = @transform_1, window_bounds = array<i64: 1, 512>}, {transform_indices = @transform_2, window_bounds = array<i64: 2, 4, 512>}]} {
    %c0 = arith.constant 0 : index
    %c0_0 = arith.constant 0 : index
    %0 = vector.load %arg1[%c0, %c0_0] : memref<4x512xf32, #tpu.memory_space<vmem>>, vector<4x512xf32>
    %c0_1 = arith.constant 0 : index
    %c0_2 = arith.constant 0 : index
    %1 = vector.load %arg2[%c0_1, %c0_2] : memref<1x512xi32, #tpu.memory_space<vmem>>, vector<1x512xi32>
    %cst = arith.constant dense<0xFF800000> : vector<512xf32>
    %2 = vector.multi_reduction <maximumf>, %0, %cst [0] : vector<4x512xf32> to vector<512xf32>
    %3 = vector.shape_cast %2 : vector<512xf32> to vector<1x512xf32>
    %4 = vector.broadcast %3 : vector<1x512xf32> to vector<4x512xf32>
    %5 = arith.subf %0, %4 : vector<4x512xf32>
    %6 = math.exp %5 : vector<4x512xf32>
    %cst_3 = arith.constant dense<0.000000e+00> : vector<512xf32>
    %7 = vector.multi_reduction <add>, %6, %cst_3 [0] : vector<4x512xf32> to vector<512xf32>
    %8 = vector.shape_cast %7 : vector<512xf32> to vector<1x512xf32>
    %9 = vector.broadcast %8 : vector<1x512xf32> to vector<4x512xf32>
    %10 = arith.divf %6, %9 : vector<4x512xf32>
    %11 = tpu.iota {dimensions = array<i32: 0>} : vector<4x512xi32>
    %12 = vector.broadcast %1 : vector<1x512xi32> to vector<4x512xi32>
    %13 = arith.cmpi eq, %12, %11 : vector<4x512xi32>
    %14 = arith.extui %13 : vector<4x512xi1> to vector<4x512xi32>
    %15 = arith.sitofp %14 : vector<4x512xi32> to vector<4x512xf32>
    %c0_i32 = arith.constant 0 : i32
    %16 = vector.broadcast %c0_i32 : i32 to vector<1x512xi32>
    %17 = arith.cmpi sge, %1, %16 : vector<1x512xi32>
    %18 = arith.extui %17 : vector<1x512xi1> to vector<1x512xi32>
    %19 = arith.sitofp %18 : vector<1x512xi32> to vector<1x512xf32>
    %20 = arith.subf %15, %10 : vector<4x512xf32>
    %21 = math.absf %20 : vector<4x512xf32>
    %22 = vector.broadcast %19 : vector<1x512xf32> to vector<4x512xf32>
    %23 = arith.mulf %21, %22 : vector<4x512xf32>
    %cst_4 = arith.constant 0.000000e+00 : f32
    %24 = vector.broadcast %cst_4 : f32 to vector<4x512xf32>
    %25 = arith.subf %24, %23 : vector<4x512xf32>
    %c0_5 = arith.constant 0 : index
    %c0_6 = arith.constant 0 : index
    %c0_7 = arith.constant 0 : index
    %26 = vector.load %arg3[%c0_5, %c0_6, %c0_7] : memref<2x4x512xf32, #tpu.memory_space<vmem>>, vector<1x4x512xf32>
    %27 = vector.shape_cast %26 : vector<1x4x512xf32> to vector<4x512xf32>
    %28 = vector.shape_cast %25 : vector<4x512xf32> to vector<1x4x512xf32>
    tpu.vector_store %arg3[%c0_5, %c0_6, %c0_7], %28 {strides = array<i32>} : memref<2x4x512xf32, #tpu.memory_space<vmem>>, vector<1x4x512xf32>,
    %c1 = arith.constant 1 : index
    %c0_8 = arith.constant 0 : index
    %c0_9 = arith.constant 0 : index
    %29 = vector.load %arg3[%c1, %c0_8, %c0_9] : memref<2x4x512xf32, #tpu.memory_space<vmem>>, vector<1x4x512xf32>
    %30 = vector.shape_cast %29 : vector<1x4x512xf32> to vector<4x512xf32>
    %31 = vector.shape_cast %15 : vector<4x512xf32> to vector<1x4x512xf32>
    tpu.vector_store %arg3[%c1, %c0_8, %c0_9], %31 {strides = array<i32>} : memref<2x4x512xf32, #tpu.memory_space<vmem>>, vector<1x4x512xf32>,
    return
  }
  func.func @transform_0(%arg0: i32) -> (i32, i32) {
    %c0_i32 = arith.constant 0 : i32
    %c0_i32_0 = arith.constant 0 : i32
    return %c0_i32, %arg0 : i32, i32
  }
  func.func @transform_1(%arg0: i32) -> (i32, i32) {
    %c0_i32 = arith.constant 0 : i32
    %c0_i32_0 = arith.constant 0 : i32
    return %c0_i32, %arg0 : i32, i32
  }
  func.func @transform_2(%arg0: i32) -> (i32, i32, i32) {
    %c0_i32 = arith.constant 0 : i32
    %c0_i32_0 = arith.constant 0 : i32
    %c0_i32_1 = arith.constant 0 : i32
    return %c0_i32, %c0_i32_0, %arg0 : i32, i32, i32
  }
}

</mosaic_0001>

<bundles_post_ra>
// kernel: tpu_custom_call.1
= control target key start
LH: loop header
LB: loop body
LE: loop exit
PB: predicated region body
PF: predicated region fallthrough
CT: control target
= control target key end

     0   :  { %7 = vsyncpa [#allocation3], 0  ;;  %s461_s0 = inlined_call_operand.hbm [shape: f32[4,512], index: 0, kind: input, shape index: {}]   ;;  %s462_s1 = inlined_call_operand.hbm [shape: s32[1,512], index: 1, kind: input, shape index: {}]   ;;  %s463_s2 = inlined_call_operand.hbm [shape: f32[2,4,512], index: 2, kind: output, shape index: {}]  }
   0x1   :  { %8 = vsyncpa [#allocation6], 0 }
   0x2   :  { %9 = vsyncpa [#allocation4], 0  ;;  %s342_s9 = smov [#allocation2]   ;;  %s343_s11 = smov [#allocation5]  }
   0x3   :  { %s16_s10 = sshll.u32 %s342_s9, 4  ;;  %s26_s12 = sshll.u32 %s343_s11, 4  ;;  %s17_s10 = int_to_ptr.vmem [resolvable:$true] %s16_s10  ;;  %s27_s12 = int_to_ptr.vmem [resolvable:$true] %s26_s12 }
   0x4   :  { %s270_s15 = scalar_lea.hbm %s461_s0, 256 }
   0x5   :  { %p271_p0 = scmp.ne.s32.totalorder %s461_s0, %s270_s15  ;;  %p274_p1 = scmp.lt.u32.totalorder %s270_s15, %s461_s0 }
   0x7   :  { %p276_p2 = pnand %p274_p1, %p271_p0 }
   0x9   :  { %279 = shalt.err (!%p276_p2)
}
   0xa   :  { %s280_s20 = scalar_lea.vmem %s17_s10, 256  ;;  %p285_p4 = scmp.lt.s32.totalorder %s17_s10, %s17_s10 }
   0xb   :  { %p281_p3 = scmp.ne.s32.totalorder %s17_s10, %s280_s20  ;;  %p286_p5 = scmp.lt.s32.totalorder %s280_s20, %s280_s20 }
   0xd   :  { %p287_p6 = por %p286_p5, %p285_p4 }
   0xf   :  { %p288_p7 = pnand %p287_p6, %p281_p3 }
  0x11   :  { %291 = shalt.err (!%p288_p7)
}
  0x12   :  { %19 = dma.hbm_to_vmem [thread:$0]  %s461_s0, 256, %s17_s10, [#allocation3]  }
  0x13   :  { %s292_s25 = scalar_lea.hbm %s462_s1, 64 }
  0x14   :  { %p293_p8 = scmp.ne.s32.totalorder %s462_s1, %s292_s25  ;;  %p296_p9 = scmp.lt.u32.totalorder %s292_s25, %s462_s1 }
  0x16   :  { %p298_p10 = pnand %p296_p9, %p293_p8 }
  0x18   :  { %301 = shalt.err (!%p298_p10)
}
  0x19   :  { %s302_s30 = scalar_lea.vmem %s27_s12, 64  ;;  %p307_p12 = scmp.lt.s32.totalorder %s27_s12, %s27_s12 }
  0x1a   :  { %p303_p11 = scmp.ne.s32.totalorder %s27_s12, %s302_s30  ;;  %p308_p13 = scmp.lt.s32.totalorder %s302_s30, %s302_s30 }
  0x1c   :  { %p309_p0 = por %p308_p13, %p307_p12 }
  0x1e   :  { %p310_p1 = pnand %p309_p0, %p303_p11 }
  0x20   :  { %313 = shalt.err (!%p310_p1)
}
  0x21   :  { %29 = dma.hbm_to_vmem [thread:$0]  %s462_s1, 64, %s27_s12, [#allocation6]  }
  0x22   :  { %336 = dma.done.wait [#allocation3], 256  }
  0x23   :  { %337 = vsyncadd [#allocation3], 4294967040 }
  0x24   :  { %338 = dma.done.wait [#allocation6], 64  }
  0x25   :  { %339 = vsyncadd [#allocation6], 4294967232  ;;  %v134_v0 = vlaneseq  ;;  %vm45_vm0 = vcmask 1043456   ;;  %v36_v4 = vld [vmem:[#allocation2] sm:$0xff]  ;;  %v391_v5 = vld [vmem:[#allocation5] sm:$0xf] }
  0x26   :  { %v37_v6 = vld [vmem:[#allocation2 + $0x8] sm:$0xff]  ;;  %v41_v7 = vcombine.high %v36_v4, %v36_v4  ;;  %v46_v8 = vsel %vm45_vm0, %v36_v4, -inf  ;;  %v344_v25 = vmov 0.0   ;;  %vm164_vm5 = vcmp.ge.s32.totalorder %v391_v5, 0  ;;  %s345_s1 = smov [#allocation7]  }
  0x27   :  { %v387_v1 = vshrl.u32 %v134_v0, 7  ;;  %v47_v11 = vrot.slane %v46_v8, 4  ;;  %v42_v12 = vcombine.high %v37_v6, %v37_v6  ;;  %v60_v13 = vsel %vm45_vm0, %v37_v6, -inf  ;;  %s236_s4 = sshll.u32 %s345_s1, 4  ;;  %s237_s4 = int_to_ptr.vmem [resolvable:$true] %s236_s4 }
  0x28   :  { %v53_v15 = vsel %vm45_vm0, %v41_v7, -inf  ;;  %v61_v19 = vrot.slane %v60_v13, 4  ;;  %s314_s5 = scalar_lea.vmem %s237_s4, 512  ;;  %p319_p3 = scmp.lt.s32.totalorder %s237_s4, %s237_s4 }
  0x29   :  { %v138_v2 = vsub.s32 0, %v387_v1  ;;  %v142_v3 = vsub.s32 1, %v387_v1  ;;  %v146_v14 = vsub.s32 2, %v387_v1  ;;  %v150_v16 = vsub.s32 3, %v387_v1  ;;  %p315_p2 = scmp.ne.s32.totalorder %s237_s4, %s314_s5  ;;  %p320_p4 = scmp.lt.s32.totalorder %s314_s5, %s314_s5 }
  0x2a   :  { %v48_v17 = vmax.f32 %v46_v8, %v47_v11  ;;  %v54_v18 = vrot.slane %v53_v15, 4  ;;  %v67_v20 = vsel %vm45_vm0, %v42_v12, -inf  ;;  %v62_v28 = vmax.f32 %v60_v13, %v61_v19 }
  0x2b   :  { %v139_v9 = vrot.slane %v391_v5, %v138_v2  ;;  %v143_v10 = vrot.slane %v391_v5, %v142_v3  ;;  %v68_v23 = vrot.slane %v67_v20, 4  ;;  %v147_v24 = vrot.slane %v391_v5, %v146_v14  ;;  %p321_p5 = por %p320_p4, %p319_p3 }
  0x2c   :  { %v49_v21 = vrot.slane %v48_v17, 2  ;;  %v55_v22 = vmax.f32 %v53_v15, %v54_v18  ;;  %v151_v29 = vrot.slane %v391_v5, %v150_v16  ;;  %v63_v33 = vrot.slane %v62_v28, 2 }
  0x2d   :  { %vm152_vm1 = vcmp.eq.s32.totalorder %v139_v9, %v387_v1  ;;  %vm153_vm2 = vcmp.eq.s32.totalorder %v143_v10, %v387_v1  ;;  %v69_v32 = vmax.f32 %v67_v20, %v68_v23  ;;  %vm154_vm3 = vcmp.eq.s32.totalorder %v147_v24, %v387_v1  ;;  %p322_p6 = pnand %p321_p5, %p315_p2 }
  0x2e   :  { %v411_v26 = vsel %vm152_vm1, 1.0, %v344_v25  ;;  %v414_v27 = vsel %vm153_vm2, 1.0, %v344_v25  ;;  %v50_v30 = vmax.f32 %v48_v17, %v49_v21  ;;  %v56_v31 = vrot.slane %v55_v22, 2 }
  0x2f   :  { %vm155_vm4 = vcmp.eq.s32.totalorder %v151_v29, %v387_v1  ;;  %v422_v34 = vsel %vm154_vm3, 1.0, %v344_v25  ;;  %v224_v35 = vcombine.low %v411_v26, %v414_v27  ;;  %v70_v38 = vrot.slane %v69_v32, 2 }
  0x30   :  { %v51_v36 = vrot.slane %v50_v30, 1  ;;  %v57_v37 = vmax.f32 %v55_v22, %v56_v31  ;;  %v427_v39 = vsel %vm155_vm4, 1.0, %v344_v25  ;;  %v64_v40 = vmax.f32 %v62_v28, %v63_v33 }
  0x31   :  { %229 = vst [vmem:[#allocation7 + $0x10] sm:$0xff] %v224_v35  ;;  %v225_v41 = vcombine.low %v422_v34, %v427_v39  ;;  %v71_v44 = vmax.f32 %v69_v32, %v70_v38 }
  0x32   :  { %v52_v42 = vmax.f32 %v50_v30, %v51_v36  ;;  %v58_v43 = vrot.slane %v57_v37, 1  ;;  %v65_v45 = vrot.slane %v64_v40, 1 }
  0x33   :  { %230 = vst [vmem:[#allocation7 + $0x18] sm:$0xff] %v225_v41  ;;  %v72_v47 = vrot.slane %v71_v44, 1 }
  0x34   :  { %v59_v46 = vmax.f32 %v57_v37, %v58_v43  ;;  %v66_v48 = vmax.f32 %v64_v40, %v65_v45  ;;  %v253_v37 = vsel %vm164_vm5, 1.0, %v344_v25 }
  0x35   :  { %v73_v50 = vmax.f32 %v71_v44, %v72_v47  ;;  %v185_v43 = vrot.slane %v253_v37, %v138_v2  ;;  %v189_v45 = vrot.slane %v253_v37, %v142_v3 }
  0x36   :  { %v78_v49 = vcombine.low %v52_v42, %v59_v46  ;;  %v193_v46 = vrot.slane %v253_v37, %v146_v14 }
  0x37   :  { %v79_v52 = vcombine.low %v66_v48, %v73_v50 }
  0x38   :  { %v82_v51 = vsub.f32 %v36_v4, %v78_v49  ;;  %v197_v49 = vrot.slane %v253_v37, %v150_v16 }
  0x39   :  { %v83_v54 = vsub.f32 %v37_v6, %v79_v52 }
  0x3a   :  { %v84_v53 = vmul.f32 1.442695, %v82_v51 }
  0x3b   :  { %v86_v55 = vmul.f32 1.442695, %v83_v54 }
  0x3c   :  { %262 = vpow2.f32 %v84_v53 }
  0x3d   :  { %264 = vpow2.f32 %v86_v55 }
  0x46   :  { %v263_v56 = vpop.eup %262 }
  0x47   :  { %v90_v57 = vcombine.high %v263_v56, %v263_v56  ;;  %v94_v58 = vsel %vm45_vm0, %v263_v56, 0.0  ;;  %v265_v59 = vpop.eup %264 }
  0x48   :  { %v95_v60 = vrot.slane %v94_v58, 4  ;;  %v91_v62 = vcombine.high %v265_v59, %v265_v59  ;;  %v108_v63 = vsel %vm45_vm0, %v265_v59, 0.0 }
  0x49   :  { %v101_v61 = vsel %vm45_vm0, %v90_v57, 0.0  ;;  %v109_v4 = vrot.slane %v108_v63, 4 }
  0x4a   :  { %v96_v0 = vadd.f32 %v95_v60, %v94_v58  ;;  %v102_v7 = vrot.slane %v101_v61, 4  ;;  %v115_v8 = vsel %vm45_vm0, %v91_v62, 0.0 }
  0x4b   :  { %v110_v10 = vadd.f32 %v109_v4, %v108_v63  ;;  %v116_v11 = vrot.slane %v115_v8, 4 }
  0x4c   :  { %v97_v6 = vrot.slane %v96_v0, 2  ;;  %v103_v9 = vadd.f32 %v102_v7, %v101_v61 }
  0x4d   :  { %v111_v15 = vrot.slane %v110_v10, 2  ;;  %v117_v17 = vadd.f32 %v116_v11, %v115_v8 }
  0x4e   :  { %v98_v12 = vadd.f32 %v97_v6, %v96_v0  ;;  %v104_v13 = vrot.slane %v103_v9, 2 }
  0x4f   :  { %v112_v20 = vadd.f32 %v111_v15, %v110_v10  ;;  %v118_v21 = vrot.slane %v117_v17, 2 }
  0x50   :  { %v99_v18 = vrot.slane %v98_v12, 1  ;;  %v105_v19 = vadd.f32 %v104_v13, %v103_v9 }
  0x51   :  { %v113_v24 = vrot.slane %v112_v20, 1  ;;  %v119_v28 = vadd.f32 %v118_v21, %v117_v17 }
  0x52   :  { %v100_v22 = vadd.f32 %v99_v18, %v98_v12  ;;  %v106_v23 = vrot.slane %v105_v19, 1 }
  0x53   :  { %v114_v30 = vadd.f32 %v113_v24, %v112_v20  ;;  %v120_v31 = vrot.slane %v119_v28, 1 }
  0x54   :  { %v107_v29 = vadd.f32 %v106_v23, %v105_v19 }
  0x55   :  { %v121_v33 = vadd.f32 %v120_v31, %v119_v28 }
  0x56   :  { %v126_v32 = vcombine.low %v100_v22, %v107_v29 }
  0x57   :  { %v127_v35 = vcombine.low %v114_v30, %v121_v33 }
  0x58   :  { %266 = vrcp.f32 %v126_v32 }
  0x59   :  { %268 = vrcp.f32 %v127_v35 }
  0x62   :  { %v267_v36 = vpop.eup %266 }
  0x63   :  { %v131_v38 = vmul.f32 %v267_v36, %v263_v56  ;;  %v269_v40 = vpop.eup %268 }
  0x64   :  { %v133_v44 = vmul.f32 %v269_v40, %v265_v59 }
  0x65   :  { %v169_v41 = vcombine.high %v131_v38, %v131_v38  ;;  %v173_v42 = vsub.f32 %v411_v26, %v131_v38 }
  0x66   :  { %v170_v48 = vcombine.high %v133_v44, %v133_v44  ;;  %v175_v25 = vsub.f32 %v422_v34, %v133_v44 }
  0x67   :  { %v174_v5 = vsub.f32 %v414_v27, %v169_v41  ;;  %v177_v47 = vand.u32 2147483647, %v173_v42 }
  0x68   :  { %v176_v2 = vsub.f32 %v427_v39, %v170_v48  ;;  %v179_v51 = vand.u32 2147483647, %v175_v25 }
  0x69   :  { %v178_v26 = vand.u32 2147483647, %v174_v5  ;;  %v202_v50 = vmul.f32 %v185_v43, %v177_v47 }
  0x6a   :  { %v180_v3 = vand.u32 2147483647, %v176_v2  ;;  %v204_v54 = vmul.f32 %v193_v46, %v179_v51 }
  0x6b   :  { %v203_v52 = vmul.f32 %v189_v45, %v178_v26  ;;  %v206_v53 = vsub.f32 0.0, %v202_v50 }
  0x6c   :  { %v205_v14 = vmul.f32 %v197_v49, %v180_v3  ;;  %v208_v56 = vsub.f32 0.0, %v204_v54 }
  0x6d   :  { %v207_v55 = vsub.f32 0.0, %v203_v52 }
  0x6e   :  { %v209_v57 = vsub.f32 0.0, %v205_v14 }
  0x6f   :  { %v214_v27 = vcombine.low %v206_v53, %v207_v55 }
  0x70   :  { %v215_v34 = vcombine.low %v208_v56, %v209_v57 }
  0x71   :  { %218 = vst [vmem:[#allocation7] sm:$0xff] %v214_v27 }
  0x72   :  { %219 = vst [vmem:[#allocation7 + $0x8] sm:$0xff] %v215_v34 }
  0x73   :  { %325 = shalt.err (!%p322_p6)
}
  0x74   :  { %s326_s8 = scalar_lea.hbm %s463_s2, 512 }
  0x75   :  { %p327_p7 = scmp.ne.s32.totalorder %s463_s2, %s326_s8  ;;  %p330_p8 = scmp.lt.u32.totalorder %s326_s8, %s463_s2 }
  0x77   :  { %p332_p9 = pnand %p330_p8, %p327_p7 }
  0x79   :  { %335 = shalt.err (!%p332_p9)
}
  0x7a   :  { %s346_s13 = smov 256   ;;  %s347_s14 = smov 16  }
  0x7b   :  { %242 = dma.vmem_to_hbm [thread:$0]  %s237_s4, 512, %s463_s2, [#allocation4], %s346_s13, %s346_s13, %s347_s14  }
  0x7c   :  { %340 = dma.done.wait [#allocation4], 512  }
  0x7d   :  { %341 = vsyncadd [#allocation4], 4294966784 }
  0x7e   :  { %246 = vsyncpa [#allocation3], 1 }
  0x7f   :  { %247 = vsyncpa [#allocation6], 1 }
  0x80   :  { %248 = vsyncpa [#allocation4], 1 }

</bundles_post_ra>
